<compile_context>
chip_gen: v7x
topology: tpu7x:2x2x1
jax: 0.10.0
libtpu: 0.0.40
codegen_flags: <defaults>
</compile_context>

<pallas_src>
import functools

import jax
import jax.numpy as jnp
from jax.experimental import pallas as pl
from jax.experimental.pallas import tpu as pltpu

_LANE = 128


def _pad_last(a, target):
    pad = target - a.shape[-1]
    if pad == 0:
        return a
    widths = [(0, 0)] * (a.ndim - 1) + [(0, pad)]
    return jnp.pad(a, widths)


def _round_up(n, m):
    return ((n + m - 1) // m) * m


def _self_attention_kernel(x_ref, w_ref, b_ref, o_ref, *, scale, dk_p, bb, n):
    # x block: (bb, N, D) -> (bb*N, D) so the fused projection fills MXU rows.
    d = x_ref.shape[-1]
    x2 = x_ref[...].reshape(bb * n, d)

    # Fused QKV projection: one wide MXU matmul + single bias broadcast-add.
    qkv = jnp.dot(x2, w_ref[...], preferred_element_type=jnp.float32) + b_ref[...]

    # Static, lane-aligned slices of the fused result.
    q = qkv[:, :dk_p].reshape(bb, n, dk_p) * scale          # scale folded into q
    k = qkv[:, dk_p:2 * dk_p].reshape(bb, n, dk_p)
    v = qkv[:, 2 * dk_p:].reshape(bb, n, -1)

    # Scores via last-dim contraction (no explicit transpose): (bb, N, N)
    s = jnp.einsum("bqd,bkd->bqk", q, k, preferred_element_type=jnp.float32)

    # Numerically stable softmax along keys.
    s = s - jnp.max(s, axis=-1, keepdims=True)
    p = jnp.exp(s)
    inv = pl.reciprocal(jnp.sum(p, axis=-1, keepdims=True), approx=True)

    # Output: (bb, N, dv_p); normalize the (smaller) output instead of p.
    out = jnp.einsum("bqk,bkd->bqd", p, v, preferred_element_type=jnp.float32) * inv
    o_ref[...] = out.astype(o_ref.dtype)


def self_attention(x, wq, bq, wk, bk, wv, bv):
    """x: (B, N, D); wq/wk: (D, dk); wv: (D, dv); biases: (1, dk)/(1, dv)."""
    B, N, D = x.shape
    dk = wq.shape[1]
    dv = wv.shape[1]
    scale = float(dk) ** -0.5

    # Lane-align the projection widths (zero padding is exact: padded q/k lanes
    # are zero so scores are unchanged; padded v lanes give zero output lanes).
    dk_p = _round_up(dk, _LANE)
    dv_p = _round_up(dv, _LANE)

    w_qkv = jnp.concatenate(
        [_pad_last(wq, dk_p), _pad_last(wk, dk_p), _pad_last(wv, dv_p)], axis=1)
    b_qkv = jnp.concatenate(
        [_pad_last(bq, dk_p), _pad_last(bk, dk_p), _pad_last(bv, dv_p)], axis=1)
    qkv_w = w_qkv.shape[1]  # 2*dk_p + dv_p

    # Block several batches per grid step so bb*N rows better fill the MXU,
    # while keeping the per-step block comfortably inside scoped VMEM.
    bb = 1
    for cand in range(B, 0, -1):
        if B % cand == 0 and cand * N <= 1024:
            bb = cand
            break

    kernel = functools.partial(
        _self_attention_kernel, scale=scale, dk_p=dk_p, bb=bb, n=N)

    out_padded = pl.pallas_call(
        kernel,
        out_shape=jax.ShapeDtypeStruct((B, N, dv_p), x.dtype),
        grid=(B // bb,),
        in_specs=[
            pl.BlockSpec((bb, N, D), lambda i: (i, 0, 0)),   # x, bb batches/step
            pl.BlockSpec((D, qkv_w), lambda i: (0, 0)),      # fused W_qkv
            pl.BlockSpec((1, qkv_w), lambda i: (0, 0)),      # fused b_qkv
        ],
        out_specs=pl.BlockSpec((bb, N, dv_p), lambda i: (i, 0, 0)),
        compiler_params=pltpu.CompilerParams(
            dimension_semantics=("parallel",)),
    )(x, w_qkv, b_qkv)

    return out_padded[:, :, :dv]


def _reference(x, wq, bq, wk, bk, wv, bv):
    dk = wq.shape[1]
    q = x @ wq + bq[0]
    k = x @ wk + bk[0]
    v = x @ wv + bv[0]
    attn = jnp.einsum("bnd,bmd->bnm", q, k) * (dk ** -0.5)
    attn = jax.nn.softmax(attn, axis=-1)
    return attn @ v


if __name__ == "__main__":
    # Small shapes consistent with the module's forward: (batch, seq, dim)
    B, N, D = 2, 8, 32
    dk, dv = 16, 32

    key = jax.random.PRNGKey(0)
    kx, kwq, kbq, kwk, kbk, kwv, kbv = jax.random.split(key, 7)

    x = jax.random.uniform(kx, (B, N, D), dtype=jnp.float32)

    # Deterministic parameter init (nn.Linear-style uniform, stored as (in, out))
    def linear_params(kw, kb, fan_in, fan_out):
        bound = 1.0 / (fan_in ** 0.5)
        w = jax.random.uniform(kw, (fan_in, fan_out), jnp.float32, -bound, bound)
        b = jax.random.uniform(kb, (1, fan_out), jnp.float32, -bound, bound)
        return w, b

    wq, bq = linear_params(kwq, kbq, D, dk)
    wk, bk = linear_params(kwk, kbk, D, dk)
    wv, bv = linear_params(kwv, kbv, D, dv)

    out = self_attention(x, wq, bq, wk, bk, wv, bv)
    out = jax.block_until_ready(out)

    ref = _reference(x, wq, bq, wk, bk, wv, bv)
    assert out.shape == (B, N, dv)
    # approx reciprocal in the softmax denominator -> slightly relaxed tolerance
    assert jnp.allclose(out, ref, atol=2e-3, rtol=2e-3), "mismatch vs reference"

    print("KERNEL_OK")
</pallas_src>

<mosaic_0001>
module attributes {stable_mosaic.version = 11 : i64} {
  func.func @_self_attention_kernel(%arg0: i32, %arg1: memref<2x8x32xf32, #tpu.memory_space<vmem>>, %arg2: memref<32x384xf32, #tpu.memory_space<vmem>>, %arg3: memref<1x384xf32, #tpu.memory_space<vmem>>, %arg4: memref<2x8x128xf32, #tpu.memory_space<vmem>>) attributes {dimension_semantics = [#tpu.dimension_semantics<parallel>], iteration_bounds = array<i64: 1>, scalar_prefetch = 0 : i64, scratch_operands = 0 : i64, tpu.core_type = #tpu.core_type<tc>, window_params = [{transform_indices = @transform_0, window_bounds = array<i64: 2, 8, 32>}, {pipeline_mode = #tpu.pipeline_mode<synchronous>, transform_indices = @transform_1, window_bounds = array<i64: 32, 384>}, {pipeline_mode = #tpu.pipeline_mode<synchronous>, transform_indices = @transform_2, window_bounds = array<i64: 1, 384>}, {transform_indices = @transform_3, window_bounds = array<i64: 2, 8, 128>}]} {
    %c0 = arith.constant 0 : index
    %c0_0 = arith.constant 0 : index
    %c0_1 = arith.constant 0 : index
    %0 = vector.load %arg1[%c0, %c0_0, %c0_1] : memref<2x8x32xf32, #tpu.memory_space<vmem>>, vector<2x8x32xf32>
    %1 = vector.shape_cast %0 : vector<2x8x32xf32> to vector<16x32xf32>
    %c0_2 = arith.constant 0 : index
    %c0_3 = arith.constant 0 : index
    %2 = vector.load %arg2[%c0_2, %c0_3] : memref<32x384xf32, #tpu.memory_space<vmem>>, vector<32x384xf32>
    %cst = arith.constant dense<0.000000e+00> : vector<16x384xf32>
    %3 = tpu.matmul %1, %2, %cst {dimension_numbers = #tpu.dot_dimension_numbers<[1], [0], [0], [1], [0, 0, 1, 1], [], []>} : vector<16x32xf32>, vector<32x384xf32>, vector<16x384xf32> -> vector<16x384xf32>
    %c0_4 = arith.constant 0 : index
    %c0_5 = arith.constant 0 : index
    %4 = vector.load %arg3[%c0_4, %c0_5] : memref<1x384xf32, #tpu.memory_space<vmem>>, vector<1x384xf32>
    %5 = vector.broadcast %4 : vector<1x384xf32> to vector<16x384xf32>
    %6 = arith.addf %3, %5 : vector<16x384xf32>
    %7 = vector.extract_strided_slice %6 {offsets = [0, 0], sizes = [16, 128], strides = [1, 1]} : vector<16x384xf32> to vector<16x128xf32>
    %8 = vector.shape_cast %7 : vector<16x128xf32> to vector<2x8x128xf32>
    %cst_6 = arith.constant 2.500000e-01 : f32
    %9 = vector.broadcast %cst_6 : f32 to vector<2x8x128xf32>
    %10 = arith.mulf %8, %9 : vector<2x8x128xf32>
    %11 = vector.extract_strided_slice %6 {offsets = [0, 128], sizes = [16, 128], strides = [1, 1]} : vector<16x384xf32> to vector<16x128xf32>
    %12 = vector.shape_cast %11 : vector<16x128xf32> to vector<2x8x128xf32>
    %13 = vector.extract_strided_slice %6 {offsets = [0, 256], sizes = [16, 128], strides = [1, 1]} : vector<16x384xf32> to vector<16x128xf32>
    %14 = vector.shape_cast %13 : vector<16x128xf32> to vector<2x8x128xf32>
    "tpu.trace_start"() <{level = 10 : i32, message = "bqd,bkd->bqk"}> : () -> ()
    %cst_7 = arith.constant dense<0.000000e+00> : vector<2x8x8xf32>
    %15 = tpu.matmul %10, %12, %cst_7 {dimension_numbers = #tpu.dot_dimension_numbers<[2], [2], [1], [1], [0, 0, 0, 1, 1, 1], [0], [0]>} : vector<2x8x128xf32>, vector<2x8x128xf32>, vector<2x8x8xf32> -> vector<2x8x8xf32>
    "tpu.trace_stop"() : () -> ()
    %cst_8 = arith.constant dense<0xFF800000> : vector<2x8xf32>
    %16 = vector.multi_reduction <maximumf>, %15, %cst_8 [2] : vector<2x8x8xf32> to vector<2x8xf32>
    %17 = vector.shape_cast %16 : vector<2x8xf32> to vector<2x8x1xf32>
    %18 = vector.broadcast %17 : vector<2x8x1xf32> to vector<2x8x8xf32>
    %19 = arith.subf %15, %18 : vector<2x8x8xf32>
    %20 = math.exp %19 : vector<2x8x8xf32>
    %cst_9 = arith.constant dense<0.000000e+00> : vector<2x8xf32>
    %21 = vector.multi_reduction <add>, %20, %cst_9 [2] : vector<2x8x8xf32> to vector<2x8xf32>
    %22 = vector.shape_cast %21 : vector<2x8xf32> to vector<2x8x1xf32>
    %23 = tpu.reciprocal %22 {approx = true} : vector<2x8x1xf32> -> vector<2x8x1xf32>
    "tpu.trace_start"() <{level = 10 : i32, message = "bqk,bkd->bqd"}> : () -> ()
    %cst_10 = arith.constant dense<0.000000e+00> : vector<2x8x128xf32>
    %24 = tpu.matmul %20, %14, %cst_10 {dimension_numbers = #tpu.dot_dimension_numbers<[2], [1], [1], [2], [0, 0, 0, 1, 1, 2], [0], [0]>} : vector<2x8x8xf32>, vector<2x8x128xf32>, vector<2x8x128xf32> -> vector<2x8x128xf32>
    "tpu.trace_stop"() : () -> ()
    %25 = vector.broadcast %23 : vector<2x8x1xf32> to vector<2x8x128xf32>
    %26 = arith.mulf %24, %25 : vector<2x8x128xf32>
    %c0_11 = arith.constant 0 : index
    %c0_12 = arith.constant 0 : index
    %c0_13 = arith.constant 0 : index
    %27 = vector.load %arg4[%c0_11, %c0_12, %c0_13] : memref<2x8x128xf32, #tpu.memory_space<vmem>>, vector<2x8x128xf32>
    tpu.vector_store %arg4[%c0_11, %c0_12, %c0_13], %26 {strides = array<i32>} : memref<2x8x128xf32, #tpu.memory_space<vmem>>, vector<2x8x128xf32>,
    return
  }
  func.func @transform_0(%arg0: i32) -> (i32, i32, i32) {
    %c0_i32 = arith.constant 0 : i32
    %c0_i32_0 = arith.constant 0 : i32
    %c0_i32_1 = arith.constant 0 : i32
    return %arg0, %c0_i32, %c0_i32_0 : i32, i32, i32
  }
  func.func @transform_1(%arg0: i32) -> (i32, i32) {
    %c0_i32 = arith.constant 0 : i32
    %c0_i32_0 = arith.constant 0 : i32
    %c0_i32_1 = arith.constant 0 : i32
    return %c0_i32, %c0_i32_0 : i32, i32
  }
  func.func @transform_2(%arg0: i32) -> (i32, i32) {
    %c0_i32 = arith.constant 0 : i32
    %c0_i32_0 = arith.constant 0 : i32
    %c0_i32_1 = arith.constant 0 : i32
    return %c0_i32, %c0_i32_0 : i32, i32
  }
  func.func @transform_3(%arg0: i32) -> (i32, i32, i32) {
    %c0_i32 = arith.constant 0 : i32
    %c0_i32_0 = arith.constant 0 : i32
    %c0_i32_1 = arith.constant 0 : i32
    return %arg0, %c0_i32, %c0_i32_0 : i32, i32, i32
  }
}

</mosaic_0001>

<bundles_post_ra>
// kernel: tpu_custom_call.1
= control target key start
LH: loop header
LB: loop body
LE: loop exit
PB: predicated region body
PF: predicated region fallthrough
CT: control target
= control target key end

     0   :  { %8 = vsyncpa [#allocation3], 0  ;;  %s818_s0 = inlined_call_operand.hbm [shape: f32[2,8,32], index: 0, kind: input, shape index: {}]   ;;  %s819_s1 = inlined_call_operand.hbm [shape: f32[32,384], index: 1, kind: input, shape index: {}]   ;;  %s820_s2 = inlined_call_operand.vmem [shape: f32[1,384], index: 2, kind: input, shape index: {}]   ;;  %s821_s3 = inlined_call_operand.hbm [shape: f32[2,8,128], index: 3, kind: output, shape index: {}]  }
   0x1   :  { %9 = vsyncpa [#allocation6], 0 }
   0x2   :  { %10 = vsyncpa [#allocation4], 0  ;;  %s720_s12 = smov [#allocation2]   ;;  %s648_s16 = scalar_lea.hbm %s818_s0, 256 }
   0x3   :  { %s16_s13 = sshll.u32 %s720_s12, 4  ;;  %p649_p0 = scmp.ne.s32.totalorder %s818_s0, %s648_s16  ;;  %s17_s13 = int_to_ptr.vmem [resolvable:$true] %s16_s13 }
   0x4   :  { %p652_p1 = scmp.lt.u32.totalorder %s648_s16, %s818_s0 }
   0x6   :  { %p654_p2 = pnand %p652_p1, %p649_p0 }
   0x8   :  { %657 = shalt.err (!%p654_p2)
}
   0x9   :  { %s658_s21 = scalar_lea.vmem %s17_s13, 256  ;;  %p663_p4 = scmp.lt.s32.totalorder %s17_s13, %s17_s13 }
   0xa   :  { %p659_p3 = scmp.ne.s32.totalorder %s17_s13, %s658_s21  ;;  %p664_p5 = scmp.lt.s32.totalorder %s658_s21, %s658_s21 }
   0xc   :  { %p665_p6 = por %p664_p5, %p663_p4 }
   0xe   :  { %p666_p7 = pnand %p665_p6, %p659_p3 }
  0x10   :  { %669 = shalt.err (!%p666_p7)
}
  0x11   :  { %s721_s22 = smov 128   ;;  %s722_s23 = smov 8  }
  0x12   :  { %22 = dma.hbm_to_vmem [thread:$0]  %s818_s0, 256, %s17_s13, [#allocation3], %s721_s22, %s721_s22, %s722_s23  }
  0x13   :  { %s723_s26 = smov [#allocation5]   ;;  %s670_s30 = scalar_lea.hbm %s819_s1, 1536 }
  0x14   :  { %s28_s27 = sshll.u32 %s723_s26, 4  ;;  %p671_p8 = scmp.ne.s32.totalorder %s819_s1, %s670_s30  ;;  %s29_s27 = int_to_ptr.vmem [resolvable:$true] %s28_s27 }
  0x15   :  { %p674_p9 = scmp.lt.u32.totalorder %s670_s30, %s819_s1 }
  0x17   :  { %p676_p10 = pnand %p674_p9, %p671_p8 }
  0x19   :  { %679 = shalt.err (!%p676_p10)
}
  0x1a   :  { %s680_s8 = scalar_lea.vmem %s29_s27, 1536  ;;  %p685_p12 = scmp.lt.s32.totalorder %s29_s27, %s29_s27 }
  0x1b   :  { %p681_p11 = scmp.ne.s32.totalorder %s29_s27, %s680_s8  ;;  %p686_p13 = scmp.lt.s32.totalorder %s680_s8, %s680_s8 }
  0x1d   :  { %p687_p0 = por %p686_p13, %p685_p12 }
  0x1f   :  { %p688_p1 = pnand %p687_p0, %p681_p11 }
  0x21   :  { %691 = shalt.err (!%p688_p1)
}
  0x22   :  { %s724_s0 = smov 384   ;;  %s725_s9 = smov 24  }
  0x23   :  { %34 = dma.hbm_to_vmem [thread:$0]  %s819_s1, 1536, %s29_s27, [#allocation6], %s724_s0, %s724_s0, %s725_s9  }
  0x24   :  { %714 = dma.done.wait [#allocation3], 256  }
  0x25   :  { %715 = vsyncadd [#allocation3], 4294967040 }
  0x26   :  { %716 = dma.done.wait [#allocation6], 1536  }
  0x27   :  { %717 = vsyncadd [#allocation6], 4294965760  ;;  %v726_v0 = vmov 0.0   ;;  %v46_v1 = vld [vmem:[#allocation5 + $0x8] sm:$0xff]  ;;  %v49_v2 = vld [vmem:[#allocation5 + $0x20] sm:$0xff]  ;;  %vm74_vm0 = vcmask 261120   ;;  %v59_v21 = vlaneseq }
  0x28   :  { %145 = vmatprep.mubr.f32.mxu0 %v726_v0  ;;  %v45_v3 = vld [vmem:[#allocation5] sm:$0xff]  ;;  %v615_v4 = vpack.c.bf16 %v49_v2, %v46_v1  ;;  %v48_v5 = vld [vmem:[#allocation5 + $0x18] sm:$0xff]  ;;  %v55_v7 = vld [vmem:[#allocation5 + $0x50] sm:$0xff]  ;;  %vm727_vm1 = vmmov 0   ;;  %vm375_vm2 = vcmask 64512  }
  0x29   :  { %v52_v6 = vld [vmem:[#allocation5 + $0x38] sm:$0xff]  ;;  %v617_v8 = vpack.c.bf16 %v48_v5, %v45_v3  ;;  %v51_v10 = vld [vmem:[#allocation5 + $0x30] sm:$0xff]  ;;  %v54_v11 = vld [vmem:[#allocation5 + $0x48] sm:$0xff]  ;;  %v60_v22 = vshrl.u32 %v59_v21, 7 }
  0x2a   :  { %v619_v9 = vpack.c.bf16 %v55_v7, %v52_v6  ;;  %v43_v12 = vld [vmem:[#allocation2] sm:$0xff]  ;;  %616 = vmatprep.subr.bf16.mxu0 %v615_v4  ;;  %v50_v14 = vld [vmem:[#allocation5 + $0x28] sm:$0xff]  ;;  %v621_v15 = vpack.c.bf16 %v54_v11, %v51_v10  ;;  %v53_v17 = vld [vmem:[#allocation5 + $0x40] sm:$0xff] }
  0x2b   :  { %v47_v13 = vld [vmem:[#allocation5 + $0x10] sm:$0xff]  ;;  %592 = vmatprep.mubr.msk.f32.mxu1 %vm74_vm0, %v43_v12  ;;  %618 = vmatpush1.bf16.msra.mxu0 %v617_v8  ;;  %v56_v18 = vld [vmem:[#allocation5 + $0x58] sm:$0xff]  ;;  %v61_v23 = vsub.s32 0, %v60_v22  ;;  %v65_v25 = vsub.s32 1, %v60_v22  ;;  %v69_v27 = vsub.s32 2, %v60_v22 }
  0x2c   :  { %v623_v16 = vpack.c.bf16 %v50_v14, %v47_v13  ;;  %620 = vmatprep.subr.bf16.mxu0 %v619_v9  ;;  %v627_v19 = vpack.c.bf16 %v56_v18, %v53_v17  ;;  %v44_v20 = vld [vmem:[#allocation2 + $0x8] sm:$0xff]  ;;  %v57_v24 = vld [vmem:[%s820_s2] sm:$0x7]  ;;  %s728_s2 = smov [#allocation7]  }
  0x2d   :  { %v62_v26 = vrot.slane %v57_v24, %v61_v23  ;;  %v66_v28 = vrot.slane %v57_v24, %v65_v25  ;;  %v70_v32 = vrot.slane %v57_v24, %v69_v27  ;;  %s551_s13 = sshll.u32 %s728_s2, 4  ;;  %s552_s13 = int_to_ptr.vmem [resolvable:$true] %s551_s13 }
  0x2e   :  { %624 = vmatprep.subr.bf16.mxu1 %v623_v16  ;;  %s692_s14 = scalar_lea.vmem %s552_s13, 256  ;;  %p697_p3 = scmp.lt.s32.totalorder %s552_s13, %s552_s13 }
  0x2f   :  { %626 = vmatpush3.bf16.msra.mxu1 %v623_v16  ;;  %622 = vmatpush1.bf16.msra.mxu0 %v621_v15  ;;  %p693_p2 = scmp.ne.s32.totalorder %s552_s13, %s692_s14  ;;  %p698_p4 = scmp.lt.s32.totalorder %s692_s14, %s692_s14 }
  0x30   :  { %628 = vmatprep.subr.bf16.mxu1 %v627_v19  ;;  %600 = vmatprep.subr.mxu0 %v726_v0 }
  0x31   :  { %p699_p5 = por %p698_p4, %p697_p3 }
  0x32   :  { %564 = vmatmul.mubr.msk.f32.vlgmr.msra.gmra.mrb[0].mxu0 %vm74_vm0, %v43_v12 }
  0x33   :  { %630 = vmatpush3.bf16.msra.mxu1 %v627_v19  ;;  %151 = vmatprep.mubr.f32.mxu0 %v726_v0  ;;  %p700_p6 = pnand %p699_p5, %p693_p2 }
  0x34   :  { %595 = vmatprep.subr.mxu1 %v726_v0 }
  0x36   :  { %593 = vmatmul.mubr.msk.f32.vlgmr.msra.gmra.mrb[0].mxu1 %vm74_vm0, %v44_v20  ;;  %565 = vmatmul.mubr.msk.f32.gmra.mrb[2].mxu0 %vm74_vm0, %v44_v20 }
  0x37   :  { %597 = vmatprep.mubr.msk.f32.mxu1 %vm727_vm1, %v726_v0  ;;  %602 = vmatprep.mubr.msk.f32.mxu0 %vm727_vm1, %v726_v0 }
 0x105   :  { %v147_v29 = vpop.f32.mrb[0].mxu0 }
 0x106   :  { %v148_v30 = vadd.f32 %v147_v29, %v62_v26  ;;  %v149_v31 = vpop.f32.mrb[1].mxu0 }
 0x107   :  { %v150_v33 = vadd.f32 %v149_v31, %v66_v28 }
 0x108   :  { %v233_v37 = vmul.f32 0.25, %v148_v30 }
 0x109   :  { %v594_v34 = vpop.f32.mrb[0].mxu1  ;;  %v153_v35 = vpop.f32.mrb[2].mxu0  ;;  %596 = vmatpush3.xpose.msra.mxu1 %v150_v33 }
 0x10a   :  { %v224_v36 = vpop.f32.mrb[1].mxu1  ;;  %v154_v38 = vadd.f32 %v153_v35, %v62_v26  ;;  %v155_v39 = vpop.f32.mrb[3].mxu0  ;;  %605 = vmatprep.subr.mxu1 %v726_v0  ;;  %v230_v42 = vadd.f32 %v594_v34, %v70_v32 }
 0x10b   :  { %v225_v40 = vadd.f32 %v224_v36, %v70_v32  ;;  %v156_v41 = vadd.f32 %v155_v39, %v66_v28 }
 0x10c   :  { %598 = vmatmul.mubr.f32.vlgmr.msra.gmra.mrb[2].mxu1 %v233_v37  ;;  %v234_v43 = vmul.f32 0.25, %v154_v38 }
 0x10d   :  { %601 = vmatpush3.xpose.msra.mxu0 %v156_v41  ;;  %606 = vmatpush3.msra.mxu1 %v225_v40 }
 0x10e   :  { %610 = vmatprep.subr.mxu0 %v726_v0  ;;  %607 = vmatprep.mubr.msk.f32.mxu1 %vm727_vm1, %v726_v0 }
 0x110   :  { %603 = vmatmul.mubr.f32.vlgmr.msra.gmra.mrb[4].mxu0 %v234_v43 }
 0x111   :  { %611 = vmatpush3.msra.mxu0 %v230_v42  ;;  %612 = vmatprep.mubr.msk.f32.mxu0 %vm727_vm1, %v726_v0 }
 0x1df   :  { %v301_v44 = vpop.f32.mrb[2].mxu1 }
 0x1e0   :  { %v599_v45 = vpop.f32.mrb[3].mxu1  ;;  %v376_v46 = vsel %vm375_vm2, %v301_v44, -inf }
 0x1e1   :  { %377 = vmax.xlane.f32.xlu0 %v376_v46 }
 0x1e3   :  { %v371_v47 = vpop.f32.mrb[4].mxu0 }
 0x1e4   :  { %v604_v48 = vpop.f32.mrb[5].mxu0  ;;  %v379_v49 = vsel %vm375_vm2, %v371_v47, -inf }
 0x1e5   :  { %380 = vmax.xlane.f32.xlu0 %v379_v49 }
 0x26e   :  { %v378_v50 = vpop.xlane.xlu0 %377 }
 0x26f   :  { %v382_v51 = vsub.f32 %v301_v44, %v378_v50 }
 0x271   :  { %v384_v52 = vmul.f32 1.442695, %v382_v51 }
 0x272   :  { %v381_v53 = vpop.xlane.xlu0 %380 }
 0x273   :  { %640 = vpow2.f32 %v384_v52  ;;  %v383_v54 = vsub.f32 %v371_v47, %v381_v53 }
 0x275   :  { %v386_v55 = vmul.f32 1.442695, %v383_v54 }
 0x277   :  { %642 = vpow2.f32 %v386_v55 }
 0x27d   :  { %v641_v56 = vpop.eup %640 }
 0x27e   :  { %608 = vmatmul.mubr.msk.f32.vlgmr.msra.gmra.mrb[4].mxu1 %vm375_vm2, %v641_v56  ;;  %v388_v57 = vsel %vm375_vm2, %v641_v56, 0.0 }
 0x27f   :  { %389 = vadd.xlane.f32.xlu1 %v388_v57 }
 0x281   :  { %v643_v58 = vpop.eup %642 }
 0x282   :  { %613 = vmatmul.mubr.msk.f32.vlgmr.msra.gmra.mrb[6].mxu0 %vm375_vm2, %v643_v58  ;;  %v391_v59 = vsel %vm375_vm2, %v643_v58, 0.0 }
 0x283   :  { %392 = vadd.xlane.f32.xlu1 %v391_v59 }
 0x30c   :  { %v390_v60 = vpop.xlane.xlu1 %389 }
 0x30d   :  { %644 = vrcp.f32 %v390_v60 }
 0x310   :  { %v393_v61 = vpop.xlane.xlu1 %392 }
 0x311   :  { %646 = vrcp.f32 %v393_v61 }
 0x317   :  { %v645_v62 = vpop.eup %644 }
 0x31b   :  { %v647_v2 = vpop.eup %646 }
 0x351   :  { %v465_v63 = vpop.f32.mrb[4].mxu1 }
 0x352   :  { %v542_v0 = vmul.f32 %v645_v62, %v465_v63  ;;  %v609_v1 = vpop.f32.mrb[5].mxu1 }
 0x354   :  { %544 = vst [vmem:[#allocation7] sm:$0xff] %v542_v0 }
 0x355   :  { %v538_v3 = vpop.f32.mrb[6].mxu0 }
 0x356   :  { %v543_v4 = vmul.f32 %v647_v2, %v538_v3  ;;  %v614_v5 = vpop.f32.mrb[7].mxu0 }
 0x358   :  { %545 = vst [vmem:[#allocation7 + $0x8] sm:$0xff] %v543_v4 }
 0x359   :  { %703 = shalt.err (!%p700_p6)
}
 0x35a   :  { %s704_s17 = scalar_lea.hbm %s821_s3, 256 }
 0x35b   :  { %p705_p7 = scmp.ne.s32.totalorder %s821_s3, %s704_s17  ;;  %p708_p8 = scmp.lt.u32.totalorder %s704_s17, %s821_s3 }
 0x35d   :  { %p710_p9 = pnand %p708_p8, %p705_p7 }
 0x35f   :  { %713 = shalt.err (!%p710_p9)
}
 0x360   :  { %557 = dma.vmem_to_hbm [thread:$0]  %s552_s13, 256, %s821_s3, [#allocation4], %s721_s22, %s721_s22, %s722_s23  }
 0x361   :  { %718 = dma.done.wait [#allocation4], 256  }
 0x362   :  { %719 = vsyncadd [#allocation4], 4294967040 }
 0x363   :  { %561 = vsyncpa [#allocation3], 1 }
 0x364   :  { %562 = vsyncpa [#allocation6], 1 }
 0x365   :  { %563 = vsyncpa [#allocation4], 1 }

</bundles_post_ra>
